<compile_context>
chip_gen: v6e
topology: v6e:2x2x1
jax: 0.10.0
libtpu: 0.0.40
codegen_flags: <defaults>
</compile_context>

<pallas_src>
import math

import jax
import jax.numpy as jnp
from jax.experimental import pallas as pl
from jax.experimental.pallas import tpu as pltpu

_LANES = 128
_MAX_TILE_ROWS = 8192          # 8192 x 128 x 4 B = 4 MiB per f32 block buffer
_MIN_GRID_STEPS = 4            # keep a few steps so v7x can shard across TCs


def _exp_curve_kernel(params_ref, t_ref, o_ref):
    # params_ref (SMEM, f32[8]):
    #   [log2_base, scale, offset, slope, intercept, cut, pad, pad]
    log2_base = params_ref[0]
    scale = params_ref[1]
    offset = params_ref[2]
    slope = params_ref[3]
    intercept = params_ref[4]
    cut = params_ref[5]

    # Upcast in-register (free on the VPU; avoids a separate XLA astype pass).
    t = t_ref[...].astype(jnp.float32)
    # pow_value = scale * base**t + offset   (base**t == exp2(t * log2(base)))
    pow_value = scale * jnp.exp2(t * log2_base) + offset
    lin_value = slope * t + intercept
    out = jnp.where(t > cut, pow_value, lin_value)
    o_ref[...] = jnp.maximum(out, jnp.float32(1e-8))


def _cdiv(a, b):
    return -(-a // b)


def _round_up(x, m):
    return ((x + m - 1) // m) * m


def exp_function_simplified_forward(t, base_log10, offset, scale, slope_param,
                                    intercept, cut):
    """Forward pass matching exp_function_simplified.forward (float32 output).

    `slope_param` mirrors the module's nn.Parameter but, exactly like the
    PyTorch forward, it is unused (slope is re-derived from the other params).
    """
    del slope_param  # forward() ignores it, matching compute_intermediate_values

    # Keep f32/bf16 inputs as-is (cast happens in-register inside the kernel);
    # anything else is converted once here.
    if t.dtype not in (jnp.float32, jnp.bfloat16):
        t = t.astype(jnp.float32)

    base_log10 = jnp.float32(base_log10)
    offset = jnp.float32(offset)
    scale = jnp.float32(scale)
    intercept = jnp.float32(intercept)
    cut = jnp.float32(cut)

    # compute_intermediate_values (scalar glue, plain JAX).
    log2_base = base_log10 * jnp.float32(math.log2(10.0))  # log2(10**base_log10)
    base_pow_cut = jnp.exp2(cut * log2_base)                # base ** cut
    slope = (scale * base_pow_cut + offset - intercept) / jnp.abs(cut)

    params = jnp.stack([
        log2_base, scale, offset, slope, intercept, cut,
        jnp.float32(0.0), jnp.float32(0.0),
    ]).astype(jnp.float32)

    # Flatten to a lane-dense 2-D slab.  Only pad to the next multiple of 128
    # (<=127 elements) when the reshape needs it; the grid handles the ragged
    # row dimension via cdiv + a partial last block (no tile_rows-granular pad).
    orig_shape = t.shape
    n = t.size
    rows = _cdiv(n, _LANES)
    pad = rows * _LANES - n

    flat = t.reshape(-1)
    if pad:
        flat = jnp.pad(flat, (0, pad))
    t2d = flat.reshape(rows, _LANES)

    # Sublane granularity: 8 for f32, 16 for bf16 (packed sublanes).
    sublane = 16 if t.dtype == jnp.bfloat16 else 8
    tile_rows = min(_MAX_TILE_ROWS,
                    _round_up(max(_cdiv(rows, _MIN_GRID_STEPS), 1), sublane))
    grid = (_cdiv(rows, tile_rows),)

    out2d = pl.pallas_call(
        _exp_curve_kernel,
        out_shape=jax.ShapeDtypeStruct((rows, _LANES), jnp.float32),
        grid=grid,
        in_specs=[
            pl.BlockSpec(memory_space=pltpu.MemorySpace.SMEM),  # scalar params
            pl.BlockSpec((tile_rows, _LANES), lambda i: (i, 0)),
        ],
        out_specs=pl.BlockSpec((tile_rows, _LANES), lambda i: (i, 0)),
        compiler_params=pltpu.CompilerParams(
            dimension_semantics=("parallel",)),
    )(params, t2d)

    if pad:
        return out2d.reshape(-1)[:n].reshape(orig_shape)
    return out2d.reshape(orig_shape)


if __name__ == "__main__":
    key = jax.random.PRNGKey(0)

    # Deterministic parameters consistent with exp_parameters_simplified /
    # the module __init__ (base is stored as log10(base)).
    base = 2.0
    base_log10 = math.log10(base)
    offset = -0.01
    scale = 0.18
    slope_param = 2.0                 # learned but unused by forward()
    intercept = 0.005
    cut = 0.25

    # Small NCHW-style input (n = 2048 -> rows = 16, no pad needed).
    x = jax.random.uniform(key, (2, 4, 16, 16), dtype=jnp.float32)

    out = exp_function_simplified_forward(
        x, base_log10, offset, scale, slope_param, intercept, cut)
    out = jax.block_until_ready(out)

    # Pure-JAX reference (same math as the PyTorch forward, no kernel).
    base_f = jnp.float32(10.0) ** jnp.float32(base_log10)
    slope_ref = (jnp.float32(scale) * base_f ** jnp.float32(cut)
                 + jnp.float32(offset) - jnp.float32(intercept)) / jnp.abs(
                     jnp.float32(cut))
    pow_value = jnp.float32(scale) * base_f ** x + jnp.float32(offset)
    lin_value = slope_ref * x + jnp.float32(intercept)
    ref = jnp.where(x > jnp.float32(cut), pow_value, lin_value)
    ref = jnp.maximum(ref, jnp.float32(1e-8))

    assert out.shape == x.shape and out.dtype == jnp.float32
    assert jnp.allclose(out, ref, rtol=1e-5, atol=1e-6), \
        float(jnp.max(jnp.abs(out - ref)))

    # Also exercise a ragged size (n % 128 != 0) to cover the pad/slice path.
    y = jax.random.uniform(jax.random.PRNGKey(1), (3, 5, 7), dtype=jnp.float32)
    out_y = jax.block_until_ready(exp_function_simplified_forward(
        y, base_log10, offset, scale, slope_param, intercept, cut))
    pow_y = jnp.float32(scale) * base_f ** y + jnp.float32(offset)
    lin_y = slope_ref * y + jnp.float32(intercept)
    ref_y = jnp.maximum(jnp.where(y > jnp.float32(cut), pow_y, lin_y),
                        jnp.float32(1e-8))
    assert out_y.shape == y.shape
    assert jnp.allclose(out_y, ref_y, rtol=1e-5, atol=1e-6), \
        float(jnp.max(jnp.abs(out_y - ref_y)))

    print("KERNEL_OK")
</pallas_src>

<mosaic_0001>
module attributes {stable_mosaic.version = 11 : i64} {
  func.func @_exp_curve_kernel(%arg0: i32, %arg1: memref<8xf32, #tpu.memory_space<smem>>, %arg2: memref<8x128xf32, #tpu.memory_space<vmem>>, %arg3: memref<8x128xf32, #tpu.memory_space<vmem>>) attributes {dimension_semantics = [#tpu.dimension_semantics<parallel>], iteration_bounds = array<i64: 2>, scalar_prefetch = 0 : i64, scratch_operands = 0 : i64, tpu.core_type = #tpu.core_type<tc>, window_params = [{transform_indices = @transform_0, window_bounds = array<i64: 8>}, {transform_indices = @transform_1, window_bounds = array<i64: 8, 128>}, {transform_indices = @transform_2, window_bounds = array<i64: 8, 128>}]} {
    %c0 = arith.constant 0 : index
    %0 = memref.load %arg1[%c0] : memref<8xf32, #tpu.memory_space<smem>>
    %c1 = arith.constant 1 : index
    %1 = memref.load %arg1[%c1] : memref<8xf32, #tpu.memory_space<smem>>
    %c2 = arith.constant 2 : index
    %2 = memref.load %arg1[%c2] : memref<8xf32, #tpu.memory_space<smem>>
    %c3 = arith.constant 3 : index
    %3 = memref.load %arg1[%c3] : memref<8xf32, #tpu.memory_space<smem>>
    %c4 = arith.constant 4 : index
    %4 = memref.load %arg1[%c4] : memref<8xf32, #tpu.memory_space<smem>>
    %c5 = arith.constant 5 : index
    %5 = memref.load %arg1[%c5] : memref<8xf32, #tpu.memory_space<smem>>
    %c0_0 = arith.constant 0 : index
    %c0_1 = arith.constant 0 : index
    %6 = vector.load %arg2[%c0_0, %c0_1] : memref<8x128xf32, #tpu.memory_space<vmem>>, vector<8x128xf32>
    %7 = vector.broadcast %0 : f32 to vector<8x128xf32>
    %8 = arith.mulf %6, %7 : vector<8x128xf32>
    %9 = math.exp2 %8 : vector<8x128xf32>
    %10 = vector.broadcast %1 : f32 to vector<8x128xf32>
    %11 = arith.mulf %10, %9 : vector<8x128xf32>
    %12 = vector.broadcast %2 : f32 to vector<8x128xf32>
    %13 = arith.addf %11, %12 : vector<8x128xf32>
    %14 = vector.broadcast %3 : f32 to vector<8x128xf32>
    %15 = arith.mulf %14, %6 : vector<8x128xf32>
    %16 = vector.broadcast %4 : f32 to vector<8x128xf32>
    %17 = arith.addf %15, %16 : vector<8x128xf32>
    %18 = vector.broadcast %5 : f32 to vector<8x128xf32>
    %19 = arith.cmpf ogt, %6, %18 : vector<8x128xf32>
    %20 = arith.select %19, %13, %17 : vector<8x128xi1>, vector<8x128xf32>
    %cst = arith.constant 9.99999993E-9 : f32
    %21 = vector.broadcast %cst : f32 to vector<8x128xf32>
    %22 = arith.maximumf %20, %21 : vector<8x128xf32>
    %c0_2 = arith.constant 0 : index
    %c0_3 = arith.constant 0 : index
    %23 = vector.load %arg3[%c0_2, %c0_3] : memref<8x128xf32, #tpu.memory_space<vmem>>, vector<8x128xf32>
    tpu.vector_store %arg3[%c0_2, %c0_3], %22 {strides = array<i32>} : memref<8x128xf32, #tpu.memory_space<vmem>>, vector<8x128xf32>,
    return
  }
  func.func @transform_0(%arg0: i32) -> i32 {
    %c0_i32 = arith.constant 0 : i32
    %c0_i32_0 = arith.constant 0 : i32
    return %c0_i32 : i32
  }
  func.func @transform_1(%arg0: i32) -> (i32, i32) {
    %c0_i32 = arith.constant 0 : i32
    %c0_i32_0 = arith.constant 0 : i32
    return %arg0, %c0_i32 : i32, i32
  }
  func.func @transform_2(%arg0: i32) -> (i32, i32) {
    %c0_i32 = arith.constant 0 : i32
    %c0_i32_0 = arith.constant 0 : i32
    return %arg0, %c0_i32 : i32, i32
  }
}

</mosaic_0001>

<bundles_post_ra>
// kernel: tpu_custom_call.1
= control target key start
LH: loop header
LB: loop body
LE: loop exit
PB: predicated region body
PF: predicated region fallthrough
CT: control target
= control target key end

     0   :  { %7 = vsyncpa [#allocation5], 0  ;;  %s647_s0 = inlined_call_operand.hbm [shape: f32[8], index: 0, kind: input, shape index: {}]   ;;  %s648_s1 = inlined_call_operand.hbm [shape: f32[16,128], index: 1, kind: input, shape index: {}]   ;;  %s649_s2 = inlined_call_operand.hbm [shape: f32[16,128], index: 2, kind: output, shape index: {}]  }
   0x1   :  { %8 = vsyncpa [#allocation3], 0 }
   0x2   :  { %10 = vsyncpa [#allocation3 + $0x1], 0 }
   0x3   :  { %11 = vsyncpa [#allocation4], 0 }
   0x4   :  { %13 = vsyncpa [#allocation4 + $0x1], 0  ;;  %s495_s9 = smov 0   ;;  %s497_s10 = smov 0  }
   0x5   :  { %s499_s11 = smov 0   ;;  %s501_s12 = smov 0  }
   0x6 LB: > { %s516_s13 = sadd.s32 4294967295, %s475_s12   ;;  %s290_s14 = sadd.s32 4294967294, %s475_s12   ;;  %s475_s12 = sphi %s501_s12, %s669_s12   ;;  %s471_s11 = sphi %s499_s11, %s668_s11   ;;  %s467_s10 = sphi %s497_s10, %s667_s10   ;;  %s463_s9 = sphi %s495_s9, %s666_s9  }
   0x7   : > { %p60_p0 = scmp.ne.s32.totalorder %s467_s10, %s463_s9  ;;  %p650_p1 = scmp.eq.s32.totalorder %s516_s13, 0 }
   0x8   : > { %p84_p2 = scmp.eq.s32.totalorder %s516_s13, 1  ;;  %p90_p3 = scmp.eq.s32.totalorder %s290_s14, 1 }
   0x9   : > { %p525_p4 = por %p650_p1, %p60_p0  ;;  %p291_p5 = scmp.ge.s32.totalorder %s475_s12, 1 }
   0xa   : > { %p530_p6 = por %p90_p3, %p60_p0  ;;  %p97_p7 = scmp.lt.s32.totalorder %s475_s12, 3 }
   0xb   : > { %s654_s15 = scalar_select %p525_p4, 1, 0 }
   0xc   : > { %s655_s16 = scalar_select %p530_p6, 1, 0 }
   0xd   : > { %p535_p8 = pnand %p291_p5, %p97_p7  ;;  %s541_s18 = sadd.s32 1, %s475_s12  }
   0xe   : > { %s44_s19 = ssub.s32 %s475_s12, %s541_s18  ;;  %s47_s20 = sadd.s32 1, %s471_s11 }
   0xf   : > { %s656_s17 = scalar_select %p535_p8, 1, 0 }
  0x10   : > { %p317_p10 = pneg %p535_p8  ;;  %p45_p12 = scmp.eq.s32.totalorder %s44_s19, 0 }
  0x11   : > { %p54_p13 = scmp.ne.s32.totalorder %s471_s11, %s467_s10  ;;  %p55_p0 = scmp.eq.s32.totalorder %s475_s12, 0 }
  0x12   : > { %p318_p11 = pnand %p317_p10, %p650_p1  ;;  %p330_p3 = scmp.lt.s32.totalorder %s475_s12, 2 }
  0x13   : > { %s477_s21 = smov [#allocation2]   ;;  %p56_p5 = por %p55_p0, %p54_p13 }
  0x14   : > { %320 = dma.hbm_to_smem (!%p318_p11), %s647_s0, 16, %s477_s21, [#allocation5]  }
  0x15   : > { %s558_s24 = scalar_select %p45_p12, %s471_s11, %s47_s20  }
  0x16   : > { %p562_p7 = por %p84_p2, %p54_p13  ;;  %s119_s26 = sand.u32 1, %s471_s11  }
  0x17   : > { %s295_s27 = sshll.u32 %s475_s12, 7  ;;  %s294_s28 = sshll.u32 %s119_s26, 3 }
  0x18   : > { %s657_s25 = scalar_select %p562_p7, 1, 0 }
  0x19   : > { %s571_s3 = scalar_lea.hbm %s648_s1, %s295_s27  ;;  %s123_s4 = scalar_lea.vmem [#allocation6], %s294_s28 }
  0x1a   : > { %s130_s5 = sshll.u32 %s123_s4, 4  ;;  %p573_p10 = pnand %p330_p3, %p56_p5  ;;  %s131_s5 = int_to_ptr.vmem [resolvable:$true] %s130_s5 }
  0x1b   : > { %s120_s7 = scalar_lea.sflag [#allocation3], %s119_s26  ;;  %s379_s8 = scalar_lea.hbm %s571_s3, 128 }
  0x1c   : > { %p380_p2 = scmp.ne.s32.totalorder %s571_s3, %s379_s8  ;;  %p381_p11 = pneg %p573_p10 }
  0x1d   : > { %s384_s20 = scalar_lea.hbm %s648_s1, 256  ;;  %p385_p0 = scmp.lt.s32.totalorder %s571_s3, %s648_s1 }
  0x1e   : > { %p382_p12 = pnand %p381_p11, %p380_p2  ;;  %p386_p3 = scmp.lt.s32.totalorder %s384_s20, %s379_s8 }
  0x20   : > { %p383_p13 = pneg %p382_p12  ;;  %p387_p5 = por %p386_p3, %p385_p0 }
  0x22   : > { %p388_p9 = pnand %p387_p5, %p383_p13 }
  0x24   : > { %391 = shalt.err (!%p388_p9)
}
  0x25   : > { %s392_s23 = scalar_lea.vmem %s131_s5, 128  ;;  %s478_s26 = smov [#allocation6]  }
  0x26   : > { %p393_p1 = scmp.ne.s32.totalorder %s131_s5, %s392_s23  ;;  %s397_s27 = sshll.u32 %s478_s26, 4  ;;  %s398_s27 = int_to_ptr.vmem [resolvable:$false] %s397_s27 }
  0x27   : > { %s399_s28 = scalar_lea.vmem %s398_s27, 256  ;;  %p400_p2 = scmp.lt.s32.totalorder %s131_s5, %s398_s27 }
  0x28   : > { %p395_p6 = pnand %p393_p1, %p381_p11  ;;  %p401_p12 = scmp.lt.s32.totalorder %s399_s28, %s392_s23 }
  0x2a   : > { %p396_p7 = pneg %p395_p6  ;;  %p402_p4 = por %p401_p12, %p400_p2 }
  0x2c   : > { %p403_p8 = pnand %p402_p4, %p396_p7 }
  0x2e   : > { %406 = shalt.err (!%p403_p8)
}
  0x2f   : > { %324 = dma.hbm_to_vmem [thread:$0]  (!%p573_p10), %s571_s3, 128, %s131_s5, %s120_s7  }
  0x30   : > { %p659_p13 = scmp.ne.s32.totalorder %s656_s17, 0 }
  0x31   : > { %p660_p9 = scmp.eq.s32.totalorder (!%p659_p13), %s516_s13, 0 }
  0x32   : > { %139 = sbr.rel (%p659_p13) target bundleno = 105 (0x69), region = 28 }
  0x37   : > { %450 = dma.done.wait (%p660_p9), [#allocation5], 16   ;;  %p661_p1 = pmov %p660_p9 }
  0x38   : > { %s598_s29 = sand.u32 1, %s467_s10   ;;  %p662_p4 = scmp.ne.s32.totalorder %s654_s15, 0 }
  0x39   : > { %452 = vsyncadd (%p661_p1), [#allocation5], 4294967280  ;;  %s298_s30 = sshll.u32 %s598_s29, 3  ;;  %s146_s4 = scalar_lea.sflag [#allocation3], %s598_s29 }
  0x3a   : > { %s149_s6 = scalar_lea.vmem [#allocation6], %s298_s30 }
  0x3b   : > { %454 = dma.done.wait (%p662_p4), %s146_s4, 128  }
  0x3c   : > { %456 = vsyncadd (%p662_p4), %s146_s4, 4294967168 }
  0x3d   : > { %154 = sfence }
  0x3e   : > { %s171_s17 = sld [smem:[#allocation2]]  ;;  %v177_v0 = vld [vmem:[%s149_s6] sm:$0xff]  ;;  %s170_s15 = scalar_lea.vmem [#allocation7], %s298_s30 }
  0x3f   : > { %s302_s3 = sld [smem:[#allocation2 + $0x3]]  ;;  %s208_s19 = sshll.u32 %s170_s15, 4  ;;  %s607_s19 = int_to_ptr.vmem [resolvable:$true] %s208_s19 }
  0x40   : > { %s300_s5 = sld [smem:[#allocation2 + $0x1]]  ;;  %s306_s20 = sshll.u32 %s516_s13, 7 }
  0x41   : > { %s303_s7 = sld [smem:[#allocation2 + $0x4]]  ;;  %s206_s23 = scalar_lea.hbm %s649_s2, %s306_s20 }
  0x42   : > { %s304_s8 = sld [smem:[#allocation2 + $0x5]]  ;;  %s195_s26 = scalar_lea.sflag [#allocation4], %s598_s29 }
  0x43   : > { %s301_s14 = sld [smem:[#allocation2 + $0x2]]  ;;  %s407_s27 = scalar_lea.vmem %s607_s19, 128 }
  0x44   : > { %v178_v1 = vstv %s171_s17  ;;  %p408_p6 = scmp.ne.s32.totalorder %s607_s19, %s407_s27  ;;  %p663_p8 = scmp.ne.s32.totalorder %s657_s25, 0 }
  0x45   : > { %v179_v2 = vmul.f32 %v178_v1, %v177_v0  ;;  %v185_v3 = vstv %s302_s3  ;;  %s479_s28 = smov [#allocation7]  }
  0x46   : > { %v186_v4 = vmul.f32 %v185_v3, %v177_v0  ;;  %v181_v5 = vstv %s300_s5  ;;  %p409_p7 = pnand %p408_p6, %p663_p8  ;;  %s411_s13 = sshll.u32 %s479_s28, 4  ;;  %s412_s13 = int_to_ptr.vmem [resolvable:$false] %s411_s13 }
  0x47   : > { %366 = vpow2.f32 %v179_v2  ;;  %v187_v6 = vstv %s303_s7  ;;  %s413_s30 = scalar_lea.vmem %s412_s13, 256  ;;  %p414_p11 = scmp.lt.s32.totalorder %s607_s19, %s412_s13 }
  0x48   : > { %v189_v7 = vstv %s304_s8  ;;  %v188_v11 = vadd.f32 %v187_v6, %v186_v4  ;;  %p410_p10 = pneg %p409_p7  ;;  %p415_p0 = scmp.lt.s32.totalorder %s413_s30, %s407_s27 }
  0x49   : > { %v183_v9 = vstv %s301_s14  ;;  %vm190_vm0 = vcmp.gt.f32.partialorder %v177_v0, %v189_v7 }
  0x4a   : > { %p416_p3 = por %p415_p0, %p414_p11 }
  0x4c   : > { %p417_p5 = pnand %p416_p3, %p410_p10 }
  0x54   : > { %v367_v8 = vpop.eup %366 }
  0x55   : > { %v182_v10 = vmul.f32 %v367_v8, %v181_v5 }
  0x57   : > { %v184_v12 = vadd.f32 %v183_v9, %v182_v10 }
  0x59   : > { %v191_v13 = vsel %vm190_vm0, %v184_v12, %v188_v11 }
  0x5a   : > { %v192_v14 = vmax.f32 %v191_v13, 1e-08 }
  0x5c   : > { %193 = vst [vmem:[%s170_s15] sm:$0xff] %v192_v14 }
  0x5d   : > { %420 = shalt.err (!%p417_p5)
}
  0x5e   : > { %s421_s4 = scalar_lea.hbm %s206_s23, 128  ;;  %s425_s17 = scalar_lea.hbm %s649_s2, 256 }
  0x5f   : > { %p422_p2 = scmp.ne.s32.totalorder %s206_s23, %s421_s4  ;;  %p426_p9 = scmp.lt.s32.totalorder %s206_s23, %s649_s2 }
  0x60   : > { %p427_p1 = scmp.lt.s32.totalorder %s425_s17, %s421_s4 }
  0x61   : > { %p423_p12 = pnand %p422_p2, %p663_p8 }
  0x62   : > { %p428_p4 = por %p427_p1, %p426_p9 }
  0x63   : > { %p424_p13 = pneg %p423_p12 }
  0x65   : > { %p429_p6 = pnand %p428_p4, %p424_p13 }
  0x67   : > { %432 = shalt.err (!%p429_p6)
}
  0x68   : > { %315 = dma.vmem_to_hbm [thread:$0]  (%p663_p8), %s607_s19, 128, %s206_s23, %s195_s26  }
  0x69 PF: > { %s220_s7 = sand.u32 1, %s463_s9   ;;  %p664_p7 = scmp.ne.s32.totalorder %s655_s16, 0 }
  0x6a   : > { %p665_p10 = scmp.ge.s32.totalorder %s475_s12, 2  ;;  %s221_s8 = scalar_lea.sflag [#allocation4], %s220_s7 }
  0x6c   : > { %p326_p11 = pnand %p665_p10, %p664_p7 }
  0x6e   : > { %p327_p0 = pneg %p326_p11 }
  0x70   : > { %458 = dma.done.wait (%p327_p0), %s221_s8, 128  }
  0x71   : > { %460 = vsyncadd (%p327_p0), %s221_s8, 4294967168  ;;  %p16_p3 = scmp.ge.s32.totalorder %s541_s18, 4   ;;  %s666_s9 = smov %s467_s10 }
  0x72   : > { %s667_s10 = smov %s471_s11  ;;  %s668_s11 = smov %s558_s24 }
  0x73   : > { %s669_s12 = smov %s541_s18  ;;  %18 = sbr.rel (!%p16_p3) target bundleno = 6 (0x6), region = 78 }
  0x78   :  { %226 = vsyncpa [#allocation3], 1 }
  0x79   :  { %228 = vsyncpa [#allocation3 + $0x1], 1 }
  0x7a   :  { %229 = vsyncpa [#allocation4], 1 }
  0x7b   :  { %231 = vsyncpa [#allocation4 + $0x1], 1 }
  0x7c   :  { %232 = vsyncpa [#allocation5], 1 }
  0x7d   :  { %234 = vsyncpa [#allocation5 + $0x1], 1 }

</bundles_post_ra>
